<compile_context>
chip_gen: v6e
topology: v6e:2x2x1
jax: 0.10.0
libtpu: 0.0.40
codegen_flags: <defaults>
</compile_context>

<pallas_src>
import jax
import jax.numpy as jnp
from jax.experimental import pallas as pl
from jax.experimental.pallas import tpu as pltpu

LANES = 128
ACC_SUBLANES = 8  # accumulator tile is one native f32 (8, 128) vreg


def _min_sublanes(dtype) -> int:
    # Native sublane tiling per dtype width: f32 -> 8, bf16 -> 16, int8/fp8 -> 32.
    return {4: 8, 2: 16, 1: 32}.get(jnp.dtype(dtype).itemsize, 8)


def _device_defaults():
    """Return (block_bytes_per_input, tensorcore_count) tuned per TPU generation."""
    kind = ""
    try:
        kind = jax.devices()[0].device_kind.lower()
    except Exception:
        pass
    if "v5" in kind:                 # 16 MiB default scoped VMEM -> keep blocks modest
        return 2 << 20, 1
    if "v6" in kind:                 # 32 MiB scoped VMEM -> 4 MiB per input block
        return 4 << 20, 1
    if "v7" in kind or "7x" in kind:  # 2 TCs per chip, 64 MiB physical VMEM per TC
        return 4 << 20, 2
    return 2 << 20, 1                # unknown / v4 etc.: conservative


def rmse_loss(outputs, targets, *, block_rows=None, chunk_rows=None,
              num_partitions=None, min_kernel_elems=1 << 20):
    """sqrt(mean((outputs - targets)**2)) — matches torch.sqrt(nn.MSELoss()(o, t)).

    block_rows:      rows (of 128 lanes) per grid step per input (None -> byte-sized
                     per generation: ~2 MiB on v5e, ~4 MiB on v6e/v7x per input block).
    chunk_rows:      rows per in-block sub-slice of the unrolled accumulate loop
                     (None -> ~256 KiB per sub-slice).
    num_partitions:  leading "parallel" grid axis (None -> TensorCore count; 2 on v7x).
    min_kernel_elems: below this size a single fused XLA reduce beats a kernel launch.
    """
    assert outputs.shape == targets.shape, (outputs.shape, targets.shape)
    n = outputs.size
    flat_o = outputs.reshape(-1)   # free bitcast for contiguous inputs
    flat_t = targets.reshape(-1)

    sub = max(_min_sublanes(outputs.dtype), _min_sublanes(targets.dtype))

    # Tiny inputs: kernel launch + DMA setup dominates; let XLA fuse it.
    if n < max(min_kernel_elems, sub * LANES):
        d = flat_o.astype(jnp.float32) - flat_t.astype(jnp.float32)
        return jnp.sqrt(jnp.sum(d * d) / jnp.float32(n))

    block_bytes, tc_count = _device_defaults()
    itemsize = max(jnp.dtype(outputs.dtype).itemsize,
                   jnp.dtype(targets.dtype).itemsize)

    rows = n // LANES              # 128-aligned prefix handled by the kernel
    rem = n - rows * LANES         # <=127 trailing elements -> tiny XLA epilogue
    # TODO(synk): a fully copy-free path for 128-misaligned n would need manual DMA
    # from a pl.ANY (HBM) ref; the prefix slice below may still cost one copy there.

    if block_rows is None:
        block_rows = max(block_bytes // (LANES * itemsize), sub)   # byte-based knob
    if chunk_rows is None:
        chunk_rows = max((256 << 10) // (LANES * itemsize), sub)   # ~256 KiB sub-slices

    # Block sizing: multiple of the dtype's native sublane count, never zero.
    br = max((min(block_rows, rows) // sub) * sub, sub)
    num_blocks = (rows + br - 1) // br
    ragged = (num_blocks * br != rows)   # last block overhangs -> mask in-kernel

    parts = num_partitions if num_partitions is not None else tc_count
    if parts < 1 or num_blocks < parts or num_blocks % parts:
        parts = 1
    bpc = num_blocks // parts            # blocks per partition (per TC on v7x)

    # In-block chunking so temporaries stay within the vreg file (v7x DMA is fast).
    if br > chunk_rows and br % chunk_rows == 0 and chunk_rows % sub == 0:
        n_chunks = br // chunk_rows
    else:
        n_chunks, chunk_rows = 1, br

    x2d = flat_o[:rows * LANES].reshape(rows, LANES)
    y2d = flat_t[:rows * LANES].reshape(rows, LANES)

    def _sse_kernel(x_ref, y_ref, o_ref):
        step = pl.program_id(1)

        @pl.when(step == 0)
        def _init():
            o_ref[...] = jnp.zeros_like(o_ref)

        blk = pl.program_id(0) * bpc + step     # linear block index
        base_row = blk * br                     # global row of this block's first row

        # Hoisted once per grid step; only materialized when masking is needed.
        row_iota = (jax.lax.broadcasted_iota(jnp.int32, (chunk_rows, LANES), 0)
                    if ragged else None)

        def accum(row0, x, y):
            d = x.astype(jnp.float32) - y.astype(jnp.float32)
            if ragged:
                # Zero out rows past the true row count (ragged last block / stale
                # edge-block data) BEFORE squaring.
                d = jnp.where(row_iota + row0 < rows, d, jnp.float32(0))
            # Fold the row axis into the (8,128) accumulator: pure VPU vreg adds,
            # no cross-lane (XLU) reduce inside the hot loop.  (Deliberately no MXU.)
            o_ref[...] += jnp.sum((d * d).reshape(-1, ACC_SUBLANES, LANES), axis=0)

        if n_chunks == 1:
            accum(base_row, x_ref[...], y_ref[...])
        else:
            def body(j, carry):
                off = pl.multiple_of(j * chunk_rows, chunk_rows)
                accum(base_row + off,
                      x_ref[pl.ds(off, chunk_rows), :],
                      y_ref[pl.ds(off, chunk_rows), :])
                return carry
            jax.lax.fori_loop(0, n_chunks, body, 0, unroll=True)

    bytes_accessed = rows * LANES * (jnp.dtype(outputs.dtype).itemsize
                                     + jnp.dtype(targets.dtype).itemsize)
    bytes_accessed += parts * ACC_SUBLANES * LANES * 4
    cost = pl.CostEstimate(flops=3 * rows * LANES,
                           transcendentals=0,
                           bytes_accessed=bytes_accessed)

    # 2 inputs x 2 pipeline buffers x block + accumulators + headroom; floor at the
    # common 32 MiB scoped default, cap under v7x's 64 MiB physical VMEM per TC.
    vmem_limit = min(max(4 * br * LANES * itemsize + (2 << 20), 32 << 20), 64 << 20)

    part_sums = pl.pallas_call(
        _sse_kernel,
        out_shape=jax.ShapeDtypeStruct((parts, ACC_SUBLANES, LANES), jnp.float32),
        grid_spec=pltpu.PrefetchScalarGridSpec(
            num_scalar_prefetch=0,
            grid=(parts, bpc),
            in_specs=[
                pl.BlockSpec((br, LANES), lambda c, i: (c * bpc + i, 0)),
                pl.BlockSpec((br, LANES), lambda c, i: (c * bpc + i, 0)),
            ],
            # One accumulator slab per partition, resident across the inner axis.
            out_specs=pl.BlockSpec((None, ACC_SUBLANES, LANES),
                                   lambda c, i: (c, 0, 0)),
        ),
        compiler_params=pltpu.CompilerParams(
            # TODO(synk): on v7x consider pltpu.CORE_PARALLEL for the leading axis.
            dimension_semantics=("parallel", "arbitrary"),
            vmem_limit_bytes=vmem_limit,
        ),
        cost_estimate=cost,
    )(x2d, y2d)

    sse = jnp.sum(part_sums)

    # <=127 trailing elements not covered by the lane-aligned prefix.
    if rem:
        dr = (flat_o[rows * LANES:].astype(jnp.float32)
              - flat_t[rows * LANES:].astype(jnp.float32))
        sse = sse + jnp.sum(dr * dr)

    # Mean over the TRUE element count (masked rows contributed zero), then sqrt.
    return jnp.sqrt(sse / jnp.float32(n))


if __name__ == "__main__":
    key = jax.random.PRNGKey(0)
    ks = jax.random.split(key, 10)

    def ref_rmse(o, t):
        d = o.astype(jnp.float32) - t.astype(jnp.float32)
        return jnp.sqrt(jnp.mean(d * d))

    # 1) SOFTS-style [batch, pred_len, channels], f32, 128-aligned element count,
    #    auto (single-block) config; force the Pallas path for the test.
    o1 = jax.random.normal(ks[0], (4, 96, 8), dtype=jnp.float32)
    t1 = jax.random.normal(ks[1], (4, 96, 8), dtype=jnp.float32)
    l1 = rmse_loss(o1, t1, min_kernel_elems=0)
    jax.block_until_ready(l1)
    assert jnp.allclose(l1, ref_rmse(o1, t1), rtol=1e-4, atol=1e-6), (l1, ref_rmse(o1, t1))

    # 2) 128-misaligned n: aligned prefix in the kernel with an in-kernel-masked
    #    ragged last block, <=127-element XLA epilogue, 2 partitions.
    o2 = jax.random.normal(ks[2], (2, 336, 21), dtype=jnp.float32)
    t2 = jax.random.normal(ks[3], (2, 336, 21), dtype=jnp.float32)
    l2 = rmse_loss(o2, t2, block_rows=8, num_partitions=2, min_kernel_elems=0)
    jax.block_until_ready(l2)
    assert jnp.allclose(l2, ref_rmse(o2, t2), rtol=1e-4, atol=1e-6), (l2, ref_rmse(o2, t2))

    # 3) bf16 inputs (upcast only inside the kernel), chunked block body
    #    (unrolled fori_loop) + 2 partitions.
    o3 = jax.random.normal(ks[4], (8, 96, 32), dtype=jnp.bfloat16)
    t3 = jax.random.normal(ks[5], (8, 96, 32), dtype=jnp.bfloat16)
    l3 = rmse_loss(o3, t3, block_rows=32, chunk_rows=16, num_partitions=2,
                   min_kernel_elems=0)
    jax.block_until_ready(l3)
    assert jnp.allclose(l3, ref_rmse(o3, t3), rtol=1e-3, atol=1e-6), (l3, ref_rmse(o3, t3))

    # 4) ragged last block AND chunked body together, auto partitions.
    o4 = jax.random.normal(ks[6], (3, 336, 21), dtype=jnp.float32)
    t4 = jax.random.normal(ks[7], (3, 336, 21), dtype=jnp.float32)
    l4 = rmse_loss(o4, t4, block_rows=64, chunk_rows=32, min_kernel_elems=0)
    jax.block_until_ready(l4)
    assert jnp.allclose(l4, ref_rmse(o4, t4), rtol=1e-4, atol=1e-6), (l4, ref_rmse(o4, t4))

    # 5) tiny input -> fused-XLA bypass path (default threshold).
    o5 = jax.random.normal(ks[8], (2, 8, 32), dtype=jnp.float32)
    t5 = jax.random.normal(ks[9], (2, 8, 32), dtype=jnp.float32)
    l5 = rmse_loss(o5, t5)
    jax.block_until_ready(l5)
    assert jnp.allclose(l5, ref_rmse(o5, t5), rtol=1e-5, atol=1e-6), (l5, ref_rmse(o5, t5))

    print("KERNEL_OK")
</pallas_src>

<mosaic_0001>
module attributes {stable_mosaic.version = 11 : i64} {
  func.func @_sse_kernel(%arg0: i32, %arg1: i32, %arg2: memref<24x128xf32, #tpu.memory_space<vmem>>, %arg3: memref<24x128xf32, #tpu.memory_space<vmem>>, %arg4: memref<1x8x128xf32, #tpu.memory_space<vmem>>) attributes {dimension_semantics = [#tpu.dimension_semantics<parallel>, #tpu.dimension_semantics<arbitrary>], iteration_bounds = array<i64: 1, 1>, scalar_prefetch = 0 : i64, scratch_operands = 0 : i64, tpu.core_type = #tpu.core_type<tc>, window_params = [{transform_indices = @transform_0, window_bounds = array<i64: 24, 128>}, {transform_indices = @transform_1, window_bounds = array<i64: 24, 128>}, {transform_indices = @transform_2, window_bounds = array<i64: 1, 8, 128>}]} {
    %c0_i32 = arith.constant 0 : i32
    %0 = arith.cmpi eq, %arg1, %c0_i32 : i32
    %1 = arith.extui %0 : i1 to i32
    %c0_i32_0 = arith.constant 0 : i32
    %2 = arith.cmpi ne, %1, %c0_i32_0 : i32
    scf.if %2 {
      %cst_10 = arith.constant 0.000000e+00 : f32
      %15 = vector.broadcast %cst_10 : f32 to vector<8x128xf32>
      %c0_11 = arith.constant 0 : index
      %c0_12 = arith.constant 0 : index
      %c0_13 = arith.constant 0 : index
      %16 = vector.load %arg4[%c0_11, %c0_12, %c0_13] : memref<1x8x128xf32, #tpu.memory_space<vmem>>, vector<1x8x128xf32>
      %17 = vector.shape_cast %16 : vector<1x8x128xf32> to vector<8x128xf32>
      %18 = vector.shape_cast %15 : vector<8x128xf32> to vector<1x8x128xf32>
      tpu.vector_store %arg4[%c0_11, %c0_12, %c0_13], %18 {strides = array<i32>} : memref<1x8x128xf32, #tpu.memory_space<vmem>>, vector<1x8x128xf32>,
    } else {
    }
    %c0 = arith.constant 0 : index
    %c0_1 = arith.constant 0 : index
    %3 = vector.load %arg2[%c0, %c0_1] : memref<24x128xf32, #tpu.memory_space<vmem>>, vector<24x128xf32>
    %c0_2 = arith.constant 0 : index
    %c0_3 = arith.constant 0 : index
    %4 = vector.load %arg3[%c0_2, %c0_3] : memref<24x128xf32, #tpu.memory_space<vmem>>, vector<24x128xf32>
    %5 = arith.subf %3, %4 : vector<24x128xf32>
    %c0_4 = arith.constant 0 : index
    %c0_5 = arith.constant 0 : index
    %c0_6 = arith.constant 0 : index
    %6 = vector.load %arg4[%c0_4, %c0_5, %c0_6] : memref<1x8x128xf32, #tpu.memory_space<vmem>>, vector<1x8x128xf32>
    %7 = vector.shape_cast %6 : vector<1x8x128xf32> to vector<8x128xf32>
    %8 = arith.mulf %5, %5 : vector<24x128xf32>
    %9 = vector.shape_cast %8 : vector<24x128xf32> to vector<3x8x128xf32>
    %cst = arith.constant dense<0.000000e+00> : vector<8x128xf32>
    %10 = vector.multi_reduction <add>, %9, %cst [0] : vector<3x8x128xf32> to vector<8x128xf32>
    %11 = arith.addf %7, %10 : vector<8x128xf32>
    %c0_7 = arith.constant 0 : index
    %c0_8 = arith.constant 0 : index
    %c0_9 = arith.constant 0 : index
    %12 = vector.load %arg4[%c0_7, %c0_8, %c0_9] : memref<1x8x128xf32, #tpu.memory_space<vmem>>, vector<1x8x128xf32>
    %13 = vector.shape_cast %12 : vector<1x8x128xf32> to vector<8x128xf32>
    %14 = vector.shape_cast %11 : vector<8x128xf32> to vector<1x8x128xf32>
    tpu.vector_store %arg4[%c0_7, %c0_8, %c0_9], %14 {strides = array<i32>} : memref<1x8x128xf32, #tpu.memory_space<vmem>>, vector<1x8x128xf32>,
    return
  }
  func.func @transform_0(%arg0: i32, %arg1: i32) -> (i32, i32) {
    %c1_i32 = arith.constant 1 : i32
    %0 = arith.muli %arg0, %c1_i32 : i32
    %1 = arith.addi %0, %arg1 : i32
    %c0_i32 = arith.constant 0 : i32
    %c0_i32_0 = arith.constant 0 : i32
    return %1, %c0_i32 : i32, i32
  }
  func.func @transform_1(%arg0: i32, %arg1: i32) -> (i32, i32) {
    %c1_i32 = arith.constant 1 : i32
    %0 = arith.muli %arg0, %c1_i32 : i32
    %1 = arith.addi %0, %arg1 : i32
    %c0_i32 = arith.constant 0 : i32
    %c0_i32_0 = arith.constant 0 : i32
    return %1, %c0_i32 : i32, i32
  }
  func.func @transform_2(%arg0: i32, %arg1: i32) -> (i32, i32, i32) {
    %c0_i32 = arith.constant 0 : i32
    %c0_i32_0 = arith.constant 0 : i32
    %c0_i32_1 = arith.constant 0 : i32
    return %arg0, %c0_i32, %c0_i32_0 : i32, i32, i32
  }
}

</mosaic_0001>

<bundles_post_ra>
// kernel: tpu_custom_call.1
= control target key start
LH: loop header
LB: loop body
LE: loop exit
PB: predicated region body
PF: predicated region fallthrough
CT: control target
= control target key end

     0   :  { %7 = vsyncpa [#allocation3], 0  ;;  %s191_s0 = inlined_call_operand.hbm [shape: f32[24,128], index: 0, kind: input, shape index: {}]   ;;  %s192_s1 = inlined_call_operand.hbm [shape: f32[24,128], index: 1, kind: input, shape index: {}]   ;;  %s193_s2 = inlined_call_operand.hbm [shape: f32[1,8,128], index: 2, kind: output, shape index: {}]  }
   0x1   :  { %8 = vsyncpa [#allocation6], 0 }
   0x2   :  { %9 = vsyncpa [#allocation4], 0  ;;  %s162_s9 = smov [#allocation2]  }
   0x3   :  { %s19_s10 = sshll.u32 %s162_s9, 4  ;;  %s20_s10 = int_to_ptr.vmem [resolvable:$true] %s19_s10 }
   0x4   :  { %s104_s11 = scalar_lea.vmem %s20_s10, 384  ;;  %p109_p1 = scmp.lt.s32.totalorder %s20_s10, %s20_s10 }
   0x5   :  { %p105_p0 = scmp.ne.s32.totalorder %s20_s10, %s104_s11  ;;  %p110_p2 = scmp.lt.s32.totalorder %s104_s11, %s104_s11 }
   0x7   :  { %p111_p3 = por %p110_p2, %p109_p1 }
   0x9   :  { %p112_p4 = pnand %p111_p3, %p105_p0 }
   0xb   :  { %115 = shalt.err (!%p112_p4)
}
   0xc   :  { %s163_s12 = smov 128   ;;  %s164_s13 = smov 8  }
   0xd   :  { %25 = dma.hbm_to_vmem [thread:$0]  %s191_s0, 384, %s20_s10, [#allocation3], %s163_s12, %s163_s12, %s164_s13  }
   0xe   :  { %s165_s16 = smov [#allocation5]  }
   0xf   :  { %s35_s17 = sshll.u32 %s165_s16, 4  ;;  %s36_s17 = int_to_ptr.vmem [resolvable:$true] %s35_s17 }
  0x10   :  { %s124_s18 = scalar_lea.vmem %s36_s17, 384  ;;  %p129_p6 = scmp.lt.s32.totalorder %s36_s17, %s36_s17 }
  0x11   :  { %p125_p5 = scmp.ne.s32.totalorder %s36_s17, %s124_s18  ;;  %p130_p7 = scmp.lt.s32.totalorder %s124_s18, %s124_s18 }
  0x13   :  { %p131_p8 = por %p130_p7, %p129_p6 }
  0x15   :  { %p132_p9 = pnand %p131_p8, %p125_p5 }
  0x17   :  { %135 = shalt.err (!%p132_p9)
}
  0x18   :  { %41 = dma.hbm_to_vmem [thread:$0]  %s192_s1, 384, %s36_s17, [#allocation6], %s163_s12, %s163_s12, %s164_s13  }
  0x19   :  { %156 = dma.done.wait [#allocation3], 384  }
  0x1a   :  { %157 = vsyncadd [#allocation3], 4294966912 }
  0x1b   :  { %158 = dma.done.wait [#allocation6], 384  }
  0x1c   :  { %159 = vsyncadd [#allocation6], 4294966912  ;;  %v57_v0 = vld [vmem:[#allocation2] sm:$0xff]  ;;  %v58_v1 = vld [vmem:[#allocation2 + $0x8] sm:$0xff]  ;;  %s166_s0 = smov [#allocation7]  }
  0x1d   :  { %v59_v2 = vld [vmem:[#allocation2 + $0x10] sm:$0xff]  ;;  %v60_v3 = vld [vmem:[#allocation5] sm:$0xff]  ;;  %v61_v4 = vld [vmem:[#allocation5 + $0x8] sm:$0xff]  ;;  %s80_s21 = sshll.u32 %s166_s0, 4  ;;  %s81_s21 = int_to_ptr.vmem [resolvable:$true] %s80_s21 }
  0x1e   :  { %v62_v5 = vld [vmem:[#allocation5 + $0x10] sm:$0xff]  ;;  %v63_v6 = vsub.f32 %v57_v0, %v60_v3  ;;  %v64_v7 = vsub.f32 %v58_v1, %v61_v4  ;;  %s136_s1 = scalar_lea.vmem %s81_s21, 128  ;;  %p141_p11 = scmp.lt.s32.totalorder %s81_s21, %s81_s21 }
  0x1f   :  { %v65_v8 = vsub.f32 %v59_v2, %v62_v5  ;;  %p137_p10 = scmp.ne.s32.totalorder %s81_s21, %s136_s1  ;;  %p142_p12 = scmp.lt.s32.totalorder %s136_s1, %s136_s1 }
  0x20   :  { %v67_v9 = vmul.f32 %v63_v6, %v63_v6  ;;  %v68_v10 = vmul.f32 %v64_v7, %v64_v7 }
  0x21   :  { %v69_v11 = vmul.f32 %v65_v8, %v65_v8  ;;  %p143_p13 = por %p142_p12, %p141_p11 }
  0x22   :  { %v70_v12 = vadd.f32 %v68_v10, %v67_v9 }
  0x23   :  { %p144_p0 = pnand %p143_p13, %p137_p10 }
  0x24   :  { %v71_v13 = vadd.f32 %v70_v12, %v69_v11 }
  0x26   :  { %73 = vst [vmem:[#allocation7] sm:$0xff] %v71_v13 }
  0x27   :  { %147 = shalt.err (!%p144_p0)
}
  0x28   :  { %83 = dma.vmem_to_hbm [thread:$0]  %s81_s21, 128, %s193_s2, [#allocation4]  }
  0x29   :  { %160 = dma.done.wait [#allocation4], 128  }
  0x2a   :  { %161 = vsyncadd [#allocation4], 4294967168 }
  0x2b   :  { %87 = vsyncpa [#allocation3], 1 }
  0x2c   :  { %88 = vsyncpa [#allocation6], 1 }
  0x2d   :  { %89 = vsyncpa [#allocation4], 1 }

</bundles_post_ra>
